<compile_context>
chip_gen: v6e
topology: v6e:2x2x1
jax: 0.10.0
libtpu: 0.0.40
codegen_flags: <defaults>
</compile_context>

<pallas_src>
import functools

import jax
import jax.numpy as jnp
from jax.experimental import pallas as pl
from jax.experimental.pallas import tpu as pltpu

LANE = 128
SUBLANE = 8
VMEM_BUDGET_BYTES = 24 * 1024 * 1024      # double-buffered working-set cap (v7x-safe)
VMEM_LIMIT_BYTES = 48 * 1024 * 1024       # explicit scoped-VMEM limit (>16MiB v5e default)


def _round_up(x, m):
    return ((x + m - 1) // m) * m


def linear_kernel_fullk(x_ref, w_ref, b_ref, o_ref):
    # Single K step: one MXU pass + fused bias add + cast + lane-dense store.
    # x_ref: [bm, D] bf16, w_ref: [D, bn] bf16, b_ref: [1, bn] f32, o_ref: [bm, bn]
    o_ref[...] = (
        jnp.dot(x_ref[...], w_ref[...], preferred_element_type=jnp.float32)
        + b_ref[...]
    ).astype(o_ref.dtype)


def linear_kernel_ktiled(x_ref, w_ref, b_ref, o_ref, acc_ref):
    # grid = (i over B tiles, j over C tiles, k over D tiles); k last / "arbitrary".
    k = pl.program_id(2)

    @pl.when(k == 0)
    def _():
        # Fold the bias into the accumulator init (no separate zero-fill / add).
        acc_ref[...] = jnp.broadcast_to(b_ref[...], acc_ref.shape)

    acc_ref[...] += jnp.dot(
        x_ref[...], w_ref[...], preferred_element_type=jnp.float32
    )

    @pl.when(k == pl.num_programs(2) - 1)
    def _():
        o_ref[...] = acc_ref[...].astype(o_ref.dtype)


def prepare_linear_params(weight, bias, compute_dtype=jnp.bfloat16):
    """One-time param packing (init/conversion time, NOT per forward call).

    weight: [C, D] (PyTorch nn.Linear layout), bias: [C]
    returns w_t: [D, C_pad] compute_dtype (pre-transposed, zero-padded to a
                 lane multiple so every store is a full unmasked vst),
            b2:  [1, C_pad] float32 (zero-padded).
    """
    C, D = weight.shape
    C_pad = _round_up(C, LANE)
    w_t = jnp.zeros((D, C_pad), compute_dtype).at[:, :C].set(
        weight.T.astype(compute_dtype)
    )
    b2 = jnp.zeros((1, C_pad), jnp.float32).at[:, :C].set(bias.astype(jnp.float32))
    return w_t, b2


@functools.partial(jax.jit, static_argnames=("num_classes", "bm", "bn", "bk"))
def linear_classifier(features, w_t, b2, num_classes, *, bm=512, bn=128, bk=512):
    """features: [B, D]; w_t: [D, C_pad]; b2: [1, C_pad]  ->  [B, num_classes]."""
    B, D = features.shape
    D_w, C_pad = w_t.shape
    assert D_w == D and C_pad % LANE == 0

    out_dtype = features.dtype
    compute_dtype = w_t.dtype
    x = features if features.dtype == compute_dtype else features.astype(compute_dtype)

    x_item = jnp.dtype(compute_dtype).itemsize
    out_item = jnp.dtype(out_dtype).itemsize

    # Class tile: lane-dense, divides C_pad.
    bn = min(bn, C_pad)
    assert bn % LANE == 0 and C_pad % bn == 0

    # Batch tile: packed-sublane aligned (8 for f32 output, 16 for bf16, ...).
    bm_align = SUBLANE * max(1, 4 // min(out_item, x_item))
    if B <= bm:
        bm = B                      # single batch tile, block == full dim (no padding)
    else:
        bm = max(bm_align, (bm // bm_align) * bm_align)

    cost = pl.CostEstimate(
        flops=2 * B * D * C_pad,
        transcendentals=0,
        bytes_accessed=B * D * x_item + D * C_pad * x_item + B * C_pad * out_item,
    )

    # Double-buffered footprint of the single-K fast path.
    fullk_bytes = 2 * (bm * D + D * bn) * x_item + 2 * bm * bn * out_item

    if fullk_bytes <= VMEM_BUDGET_BYTES:
        # ---- Fast path: whole K in one step, no accumulator, no x/w padding ----
        grid = (pl.cdiv(B, bm), C_pad // bn)
        out = pl.pallas_call(
            linear_kernel_fullk,
            out_shape=jax.ShapeDtypeStruct((B, C_pad), out_dtype),
            grid=grid,
            in_specs=[
                pl.BlockSpec((bm, D), lambda i, j: (i, 0)),
                pl.BlockSpec((D, bn), lambda i, j: (0, j)),
                pl.BlockSpec((1, bn), lambda i, j: (0, j)),
            ],
            out_specs=pl.BlockSpec((bm, bn), lambda i, j: (i, j)),
            compiler_params=pltpu.CompilerParams(
                dimension_semantics=("parallel", "parallel"),
                vmem_limit_bytes=VMEM_LIMIT_BYTES,
            ),
            cost_estimate=cost,
        )(x, w_t, b2)
        return out[:, :num_classes]

    # ---- K-tiled fallback for very large D ----
    D_pad = _round_up(D, LANE)
    bk = _round_up(min(bk, D_pad), LANE)
    while D_pad % bk != 0:
        bk -= LANE

    xk, wk = x, w_t
    if D_pad != D:
        # TODO(synk): lane-padding K here costs one extra pass over the
        # activations; prefer a lane-aligned input_dim to avoid it entirely.
        xk = jnp.zeros((B, D_pad), compute_dtype).at[:, :D].set(x)
        wk = jnp.zeros((D_pad, C_pad), compute_dtype).at[:D, :].set(w_t)

    grid = (pl.cdiv(B, bm), C_pad // bn, D_pad // bk)
    out = pl.pallas_call(
        linear_kernel_ktiled,
        out_shape=jax.ShapeDtypeStruct((B, C_pad), out_dtype),
        grid=grid,
        in_specs=[
            pl.BlockSpec((bm, bk), lambda i, j, k: (i, k)),
            pl.BlockSpec((bk, bn), lambda i, j, k: (k, j)),
            pl.BlockSpec((1, bn), lambda i, j, k: (0, j)),
        ],
        out_specs=pl.BlockSpec((bm, bn), lambda i, j, k: (i, j)),
        scratch_shapes=[pltpu.VMEM((bm, bn), jnp.float32)],
        compiler_params=pltpu.CompilerParams(
            dimension_semantics=("parallel", "parallel", "arbitrary"),
            vmem_limit_bytes=VMEM_LIMIT_BYTES,
        ),
        cost_estimate=cost,
    )(xk, wk, b2)
    return out[:, :num_classes]


if __name__ == "__main__":
    # Small shapes consistent with the module: batch=8, input_dim=32, num_classes=3
    B, D, C = 8, 32, 3
    key = jax.random.PRNGKey(0)
    k_x, k_w, k_b = jax.random.split(key, 3)

    features = jax.random.normal(k_x, (B, D), dtype=jnp.float32)
    # Deterministic init mimicking nn.Linear's uniform(-1/sqrt(D), 1/sqrt(D))
    bound = 1.0 / jnp.sqrt(jnp.float32(D))
    weight = jax.random.uniform(k_w, (C, D), minval=-bound, maxval=bound,
                                dtype=jnp.float32)
    bias = jax.random.uniform(k_b, (C,), minval=-bound, maxval=bound,
                              dtype=jnp.float32)

    # One-time packing (hoisted out of the per-call path).
    w_t, b2 = prepare_linear_params(weight, bias)

    out = linear_classifier(features, w_t, b2, C)
    out = jax.block_until_ready(out)
    assert out.shape == (B, C)

    # Semantic check vs. the f32 PyTorch forward (loose: kernel uses bf16 MXU inputs).
    ref_f32 = features @ weight.T + bias
    assert jnp.allclose(out, ref_f32, atol=2e-2, rtol=2e-2)

    # Tight check vs. a reference with the same bf16-in / f32-accumulate compute.
    ref_bf16 = jnp.dot(
        features.astype(jnp.bfloat16), weight.T.astype(jnp.bfloat16),
        preferred_element_type=jnp.float32,
    ) + bias
    assert jnp.allclose(out, ref_bf16, atol=1e-3, rtol=1e-3)

    print("KERNEL_OK")
</pallas_src>

<mosaic_0001>
module attributes {stable_mosaic.version = 11 : i64} {
  func.func @linear_kernel_fullk(%arg0: i32, %arg1: i32, %arg2: memref<8x32xbf16, #tpu.memory_space<vmem>>, %arg3: memref<32x128xbf16, #tpu.memory_space<vmem>>, %arg4: memref<1x128xf32, #tpu.memory_space<vmem>>, %arg5: memref<8x128xf32, #tpu.memory_space<vmem>>) attributes {dimension_semantics = [#tpu.dimension_semantics<parallel>, #tpu.dimension_semantics<parallel>], iteration_bounds = array<i64: 1, 1>, scalar_prefetch = 0 : i64, scratch_operands = 0 : i64, tpu.core_type = #tpu.core_type<tc>, window_params = [{transform_indices = @transform_0, window_bounds = array<i64: 8, 32>}, {transform_indices = @transform_1, window_bounds = array<i64: 32, 128>}, {transform_indices = @transform_2, window_bounds = array<i64: 1, 128>}, {transform_indices = @transform_3, window_bounds = array<i64: 8, 128>}]} {
    %c0 = arith.constant 0 : index
    %c0_0 = arith.constant 0 : index
    %0 = vector.load %arg2[%c0, %c0_0] : memref<8x32xbf16, #tpu.memory_space<vmem>>, vector<8x32xbf16>
    %c0_1 = arith.constant 0 : index
    %c0_2 = arith.constant 0 : index
    %1 = vector.load %arg3[%c0_1, %c0_2] : memref<32x128xbf16, #tpu.memory_space<vmem>>, vector<32x128xbf16>
    %cst = arith.constant dense<0.000000e+00> : vector<8x128xf32>
    %2 = tpu.matmul %0, %1, %cst {dimension_numbers = #tpu.dot_dimension_numbers<[1], [0], [0], [1], [0, 0, 1, 1], [], []>} : vector<8x32xbf16>, vector<32x128xbf16>, vector<8x128xf32> -> vector<8x128xf32>
    %c0_3 = arith.constant 0 : index
    %c0_4 = arith.constant 0 : index
    %3 = vector.load %arg4[%c0_3, %c0_4] : memref<1x128xf32, #tpu.memory_space<vmem>>, vector<1x128xf32>
    %4 = vector.broadcast %3 : vector<1x128xf32> to vector<8x128xf32>
    %5 = arith.addf %2, %4 : vector<8x128xf32>
    %c0_5 = arith.constant 0 : index
    %c0_6 = arith.constant 0 : index
    %6 = vector.load %arg5[%c0_5, %c0_6] : memref<8x128xf32, #tpu.memory_space<vmem>>, vector<8x128xf32>
    tpu.vector_store %arg5[%c0_5, %c0_6], %5 {strides = array<i32>} : memref<8x128xf32, #tpu.memory_space<vmem>>, vector<8x128xf32>,
    return
  }
  func.func @transform_0(%arg0: i32, %arg1: i32) -> (i32, i32) {
    %c0_i32 = arith.constant 0 : i32
    %c0_i32_0 = arith.constant 0 : i32
    return %arg0, %c0_i32 : i32, i32
  }
  func.func @transform_1(%arg0: i32, %arg1: i32) -> (i32, i32) {
    %c0_i32 = arith.constant 0 : i32
    %c0_i32_0 = arith.constant 0 : i32
    return %c0_i32, %arg1 : i32, i32
  }
  func.func @transform_2(%arg0: i32, %arg1: i32) -> (i32, i32) {
    %c0_i32 = arith.constant 0 : i32
    %c0_i32_0 = arith.constant 0 : i32
    return %c0_i32, %arg1 : i32, i32
  }
  func.func @transform_3(%arg0: i32, %arg1: i32) -> (i32, i32) {
    %c0_i32 = arith.constant 0 : i32
    return %arg0, %arg1 : i32, i32
  }
}

</mosaic_0001>

<bundles_post_ra>
// kernel: linear_classifier.1
= control target key start
LH: loop header
LB: loop body
LE: loop exit
PB: predicated region body
PF: predicated region fallthrough
CT: control target
= control target key end

     0   :  { %8 = vsyncpa [#allocation3], 0  ;;  %s147_s12 = smov [#allocation2]   ;;  %s184_s0 = inlined_call_operand.vmem [shape: bf16[8,32], index: 0, kind: input, shape index: {}]   ;;  %s185_s1 = inlined_call_operand.hbm [shape: bf16[32,128], index: 1, kind: input, shape index: {}]   ;;  %s186_s2 = inlined_call_operand.vmem [shape: f32[1,128], index: 2, kind: input, shape index: {}]   ;;  %s187_s3 = inlined_call_operand.vmem [shape: f32[8,128], index: 3, kind: output, shape index: {}]  }
   0x1   :  { %s16_s13 = sshll.u32 %s147_s12, 4  ;;  %s17_s13 = int_to_ptr.vmem [resolvable:$true] %s16_s13 }
   0x2   :  { %s133_s14 = scalar_lea.vmem %s17_s13, 256  ;;  %p138_p1 = scmp.lt.s32.totalorder %s17_s13, %s17_s13 }
   0x3   :  { %p134_p0 = scmp.ne.s32.totalorder %s17_s13, %s133_s14  ;;  %p139_p2 = scmp.lt.s32.totalorder %s133_s14, %s133_s14 }
   0x5   :  { %p140_p3 = por %p139_p2, %p138_p1 }
   0x7   :  { %p141_p4 = pnand %p140_p3, %p134_p0 }
   0x9   :  { %144 = shalt.err (!%p141_p4)
}
   0xa   :  { %s148_s15 = smov 64   ;;  %s149_s16 = smov 4  }
   0xb   :  { %22 = dma.hbm_to_vmem [thread:$0]  %s185_s1, 256, %s17_s13, [#allocation3], %s148_s15, %s148_s15, %s149_s16  }
   0xc   :  { %145 = dma.done.wait [#allocation3], 256  }
   0xd   :  { %146 = vsyncadd [#allocation3], 4294967040  ;;  %v150_v0 = vmov 0.0   ;;  %vm151_vm0 = vmmov 0   ;;  %v123_v1 = vld [vmem:[#allocation2 + $0x8] sm:$0xff]   ;;  %v124_v2 = vld [vmem:[#allocation2] sm:$0xff]  }
   0xe   :  { %110 = vmatprep.subr.bf16.mxu0 %v150_v0  ;;  %114 = vmatprep.mubr.msk.bf16.mxu0 %vm151_vm0, %v150_v0  ;;  %v29_v3 = vld [vmem:[%s184_s0] sm:$0xf]  ;;  %vm53_vm1 = vcmask 261120  }
   0xf   :  { %111 = vmatpush3.bf16.msra.mxu0 %v123_v1  ;;  %v103_v4 = vld [vmem:[%s186_s2] ss:$0 sm:$0xff] }
  0x10   :  { %112 = vmatprep.subr.bf16.mxu0 %v150_v0 }
  0x13   :  { %113 = vmatpush3.bf16.msra.mxu0 %v124_v2 }
  0x16   :  { %115 = vmatmul.mubr.msk.bf16.vlgmr.msra.gmra.mxu0 %vm53_vm1, %v29_v3 }
  0xd6   :  { %v91_v5 = vpop.f32.mrf.mxu0 }
  0xd7   :  { %v92_v6 = vadd.f32 %v103_v4, %v91_v5 }
  0xd8   :  { %v116_v7 = vpop.f32.mrf.mxu0 }
  0xd9   :  { %97 = vst [vmem:[%s187_s3] sm:$0xff] %v92_v6 }
  0xda   :  { %v94_v8 = vpop.f32.mrf.mxu0 }
  0xdc   :  { %v117_v9 = vpop.f32.mrf.mxu0 }
  0xdd   :  { %102 = vsyncpa [#allocation3], 1 }

</bundles_post_ra>
